<compile_context>
chip_gen: v7x
topology: tpu7x:2x2x1
jax: 0.10.0
libtpu: 0.0.40
codegen_flags: <defaults>
</compile_context>

<pallas_src>
import jax
import jax.numpy as jnp
from jax.experimental import pallas as pl
from jax.experimental.pallas import tpu as pltpu

WIDTHS = [2, 12, 12, 10]
_LANE = 128
_MAX_BATCH_TILE = 512


def _round_up(n, m):
    return ((n + m - 1) // m) * m


def _mlp_kernel(x_ref, w_ref, a_ref, o_ref):
    # x_ref : (2, B_tile)   input, batch on lanes
    # w_ref : (3, 12, 12)   packed effective transposed weights (scale folded)
    # a_ref : (2, 12, 1)    packed per-channel PReLU params
    # o_ref : (10, B_tile)  output, batch on lanes
    xT = x_ref[...]
    w = w_ref[...]
    a = a_ref[...]

    # Layer 1 (K=2): two VPU broadcast multiply-adds, no MXU round-trip.
    h = w[0, :, 0:1] * xT[0:1, :] + w[0, :, 1:2] * xT[1:2, :]          # (12, B)
    h = jnp.where(h > 0.0, h, h * a[0])                                # PReLU

    # Layer 2 (12x12): MXU, batch fills the lane axis.
    h = jnp.dot(w[1], h, preferred_element_type=jnp.float32)           # (12, B)
    h = jnp.where(h > 0.0, h, h * a[1])

    # Layer 3 (10x12): MXU, lane-dense output store.
    o_ref[...] = jnp.dot(w[2, :10, :], h,
                         preferred_element_type=jnp.float32).astype(o_ref.dtype)


@jax.jit
def transformer_network_forward(x, params):
    """x: [B, 2] float32 -> [B, 10] float32."""
    (wp1, wn1, s1, a1, wp2, wn2, s2, a2, wp3, wn3, s3) = params
    B = x.shape[0]

    # Effective weights with the per-output-channel scale folded in, transposed
    # to [w_out, w_in].  (h @ W_eff) * s == ((W_eff * s)^T @ h^T)^T  (exact).
    def eff_t(wp, wn, s):
        w_eff = jnp.maximum(wp, 0.0) - jnp.maximum(wn, 0.0)            # (in, out)
        return (w_eff * s).T                                           # (out, in)

    wt1 = eff_t(wp1, wn1, s1)      # (12, 2)
    wt2 = eff_t(wp2, wn2, s2)      # (12, 12)
    wt3 = eff_t(wp3, wn3, s3)      # (10, 12)

    # Pack every parameter into two small operands -> 2 parameter DMAs.
    w_slab = jnp.zeros((3, 12, 12), jnp.float32)
    w_slab = w_slab.at[0, :, :2].set(wt1)
    w_slab = w_slab.at[1, :, :].set(wt2)
    w_slab = w_slab.at[2, :10, :].set(wt3)
    a_slab = jnp.stack([a1.reshape(12, 1), a2.reshape(12, 1)], axis=0)  # (2,12,1)

    # Lane-dense, transposed activation layout: batch on the 128-lane axis.
    b_pad = max(_round_up(B, _LANE), _LANE)
    b_tile = min(_MAX_BATCH_TILE, b_pad)
    b_pad = _round_up(b_pad, b_tile)
    xT = jnp.zeros((WIDTHS[0], b_pad), jnp.float32).at[:, :B].set(x.T)

    grid = (b_pad // b_tile,)
    outT = pl.pallas_call(
        _mlp_kernel,
        out_shape=jax.ShapeDtypeStruct((WIDTHS[-1], b_pad), jnp.float32),
        grid_spec=pltpu.PrefetchScalarGridSpec(
            num_scalar_prefetch=0,
            grid=grid,
            in_specs=[
                pl.BlockSpec((WIDTHS[0], b_tile), lambda i: (0, i)),
                pl.BlockSpec((3, 12, 12), lambda i: (0, 0, 0)),   # resident
                pl.BlockSpec((2, 12, 1), lambda i: (0, 0, 0)),    # resident
            ],
            out_specs=pl.BlockSpec((WIDTHS[-1], b_tile), lambda i: (0, i)),
        ),
        compiler_params=pltpu.CompilerParams(
            dimension_semantics=("parallel",)),   # megacore split on v7x
    )(xT, w_slab, a_slab)

    return outT[:, :B].T


def reference_forward(x, params):
    """Pure-JAX reference with identical semantics (correctness check)."""
    (wp1, wn1, s1, a1, wp2, wn2, s2, a2, wp3, wn3, s3) = params

    def lin(h, wp, wn, s):
        w = jnp.maximum(wp, 0.0) - jnp.maximum(wn, 0.0)
        return jnp.dot(h, w) * s

    def act(h, a):
        return jnp.where(h > 0.0, h, h * a)

    h = act(lin(x, wp1, wn1, s1), a1)
    h = act(lin(h, wp2, wn2, s2), a2)
    return lin(h, wp3, wn3, s3)


def init_params(key):
    """Deterministic parameter init matching widths [2, 12, 12, 10]."""
    keys = jax.random.split(key, 8)
    params = []
    k_idx = 0
    for li, (w_in, w_out) in enumerate(zip(WIDTHS[:-1], WIDTHS[1:])):
        wp = jax.random.uniform(keys[k_idx], (w_in, w_out), jnp.float32,
                                minval=0.0, maxval=1.0 / w_in)
        k_idx += 1
        wn = jax.random.uniform(keys[k_idx], (w_in, w_out), jnp.float32,
                                minval=0.0, maxval=1.0 / w_in)
        k_idx += 1
        scale = jnp.ones((1, w_out), jnp.float32)
        params.extend([wp, wn, scale])
        if li < len(WIDTHS) - 2:   # activation between hidden layers only
            act_p = jnp.full((1, w_out), 0.25, jnp.float32)
            params.append(act_p)
    return tuple(params)


if __name__ == "__main__":
    key = jax.random.PRNGKey(0)
    k_x, k_p = jax.random.split(key)

    batch = 8
    x = jax.random.normal(k_x, (batch, WIDTHS[0]), jnp.float32)
    params = init_params(k_p)

    out = transformer_network_forward(x, params)
    out = jax.block_until_ready(out)

    ref = reference_forward(x, params)

    assert out.shape == (batch, WIDTHS[-1])
    assert out.dtype == jnp.float32
    assert bool(jnp.all(jnp.isfinite(out)))
    assert bool(jnp.allclose(out, ref, atol=1e-5, rtol=1e-5))
    print("KERNEL_OK")
</pallas_src>

<mosaic_0001>
module attributes {stable_mosaic.version = 11 : i64} {
  func.func @_mlp_kernel(%arg0: i32, %arg1: memref<2x128xf32, #tpu.memory_space<vmem>>, %arg2: memref<3x12x12xf32, #tpu.memory_space<vmem>>, %arg3: memref<2x12x1xf32, #tpu.memory_space<vmem>>, %arg4: memref<10x128xf32, #tpu.memory_space<vmem>>) attributes {dimension_semantics = [#tpu.dimension_semantics<parallel>], iteration_bounds = array<i64: 1>, scalar_prefetch = 0 : i64, scratch_operands = 0 : i64, tpu.core_type = #tpu.core_type<tc>, window_params = [{transform_indices = @transform_0, window_bounds = array<i64: 2, 128>}, {pipeline_mode = #tpu.pipeline_mode<synchronous>, transform_indices = @transform_1, window_bounds = array<i64: 3, 12, 12>}, {pipeline_mode = #tpu.pipeline_mode<synchronous>, transform_indices = @transform_2, window_bounds = array<i64: 2, 12, 1>}, {transform_indices = @transform_3, window_bounds = array<i64: 10, 128>}]} {
    %c0 = arith.constant 0 : index
    %c0_0 = arith.constant 0 : index
    %0 = vector.load %arg1[%c0, %c0_0] : memref<2x128xf32, #tpu.memory_space<vmem>>, vector<2x128xf32>
    %c0_1 = arith.constant 0 : index
    %c0_2 = arith.constant 0 : index
    %c0_3 = arith.constant 0 : index
    %1 = vector.load %arg2[%c0_1, %c0_2, %c0_3] : memref<3x12x12xf32, #tpu.memory_space<vmem>>, vector<3x12x12xf32>
    %c0_4 = arith.constant 0 : index
    %c0_5 = arith.constant 0 : index
    %c0_6 = arith.constant 0 : index
    %2 = vector.load %arg3[%c0_4, %c0_5, %c0_6] : memref<2x12x1xf32, #tpu.memory_space<vmem>>, vector<2x12x1xf32>
    %3 = vector.extract_strided_slice %1 {offsets = [0, 0, 0], sizes = [1, 12, 1], strides = [1, 1, 1]} : vector<3x12x12xf32> to vector<1x12x1xf32>
    %4 = vector.shape_cast %3 : vector<1x12x1xf32> to vector<12x1xf32>
    %5 = vector.extract_strided_slice %0 {offsets = [0, 0], sizes = [1, 128], strides = [1, 1]} : vector<2x128xf32> to vector<1x128xf32>
    %6 = vector.broadcast %4 : vector<12x1xf32> to vector<12x128xf32>
    %7 = vector.broadcast %5 : vector<1x128xf32> to vector<12x128xf32>
    %8 = arith.mulf %6, %7 : vector<12x128xf32>
    %9 = vector.extract_strided_slice %1 {offsets = [0, 0, 1], sizes = [1, 12, 1], strides = [1, 1, 1]} : vector<3x12x12xf32> to vector<1x12x1xf32>
    %10 = vector.shape_cast %9 : vector<1x12x1xf32> to vector<12x1xf32>
    %11 = vector.extract_strided_slice %0 {offsets = [1, 0], sizes = [1, 128], strides = [1, 1]} : vector<2x128xf32> to vector<1x128xf32>
    %12 = vector.broadcast %10 : vector<12x1xf32> to vector<12x128xf32>
    %13 = vector.broadcast %11 : vector<1x128xf32> to vector<12x128xf32>
    %14 = arith.mulf %12, %13 : vector<12x128xf32>
    %15 = arith.addf %8, %14 : vector<12x128xf32>
    %cst = arith.constant 0.000000e+00 : f32
    %16 = vector.broadcast %cst : f32 to vector<12x128xf32>
    %17 = arith.cmpf ogt, %15, %16 : vector<12x128xf32>
    %18 = vector.extract_strided_slice %2 {offsets = [0, 0, 0], sizes = [1, 12, 1], strides = [1, 1, 1]} : vector<2x12x1xf32> to vector<1x12x1xf32>
    %19 = vector.shape_cast %18 : vector<1x12x1xf32> to vector<12x1xf32>
    %20 = vector.broadcast %19 : vector<12x1xf32> to vector<12x128xf32>
    %21 = arith.mulf %15, %20 : vector<12x128xf32>
    %22 = arith.select %17, %15, %21 : vector<12x128xi1>, vector<12x128xf32>
    %23 = vector.extract_strided_slice %1 {offsets = [1, 0, 0], sizes = [1, 12, 12], strides = [1, 1, 1]} : vector<3x12x12xf32> to vector<1x12x12xf32>
    %24 = vector.shape_cast %23 : vector<1x12x12xf32> to vector<12x12xf32>
    %cst_7 = arith.constant dense<0.000000e+00> : vector<12x128xf32>
    %25 = tpu.matmul %24, %22, %cst_7 {dimension_numbers = #tpu.dot_dimension_numbers<[1], [0], [0], [1], [0, 0, 1, 1], [], []>} : vector<12x12xf32>, vector<12x128xf32>, vector<12x128xf32> -> vector<12x128xf32>
    %cst_8 = arith.constant 0.000000e+00 : f32
    %26 = vector.broadcast %cst_8 : f32 to vector<12x128xf32>
    %27 = arith.cmpf ogt, %25, %26 : vector<12x128xf32>
    %28 = vector.extract_strided_slice %2 {offsets = [1, 0, 0], sizes = [1, 12, 1], strides = [1, 1, 1]} : vector<2x12x1xf32> to vector<1x12x1xf32>
    %29 = vector.shape_cast %28 : vector<1x12x1xf32> to vector<12x1xf32>
    %30 = vector.broadcast %29 : vector<12x1xf32> to vector<12x128xf32>
    %31 = arith.mulf %25, %30 : vector<12x128xf32>
    %32 = arith.select %27, %25, %31 : vector<12x128xi1>, vector<12x128xf32>
    %33 = vector.extract_strided_slice %1 {offsets = [2, 0, 0], sizes = [1, 10, 12], strides = [1, 1, 1]} : vector<3x12x12xf32> to vector<1x10x12xf32>
    %34 = vector.shape_cast %33 : vector<1x10x12xf32> to vector<10x12xf32>
    %cst_9 = arith.constant dense<0.000000e+00> : vector<10x128xf32>
    %35 = tpu.matmul %34, %32, %cst_9 {dimension_numbers = #tpu.dot_dimension_numbers<[1], [0], [0], [1], [0, 0, 1, 1], [], []>} : vector<10x12xf32>, vector<12x128xf32>, vector<10x128xf32> -> vector<10x128xf32>
    %c0_10 = arith.constant 0 : index
    %c0_11 = arith.constant 0 : index
    %36 = vector.load %arg4[%c0_10, %c0_11] : memref<10x128xf32, #tpu.memory_space<vmem>>, vector<10x128xf32>
    tpu.vector_store %arg4[%c0_10, %c0_11], %35 {strides = array<i32>} : memref<10x128xf32, #tpu.memory_space<vmem>>, vector<10x128xf32>,
    return
  }
  func.func @transform_0(%arg0: i32) -> (i32, i32) {
    %c0_i32 = arith.constant 0 : i32
    %c0_i32_0 = arith.constant 0 : i32
    return %c0_i32, %arg0 : i32, i32
  }
  func.func @transform_1(%arg0: i32) -> (i32, i32, i32) {
    %c0_i32 = arith.constant 0 : i32
    %c0_i32_0 = arith.constant 0 : i32
    %c0_i32_1 = arith.constant 0 : i32
    %c0_i32_2 = arith.constant 0 : i32
    return %c0_i32, %c0_i32_0, %c0_i32_1 : i32, i32, i32
  }
  func.func @transform_2(%arg0: i32) -> (i32, i32, i32) {
    %c0_i32 = arith.constant 0 : i32
    %c0_i32_0 = arith.constant 0 : i32
    %c0_i32_1 = arith.constant 0 : i32
    %c0_i32_2 = arith.constant 0 : i32
    return %c0_i32, %c0_i32_0, %c0_i32_1 : i32, i32, i32
  }
  func.func @transform_3(%arg0: i32) -> (i32, i32) {
    %c0_i32 = arith.constant 0 : i32
    %c0_i32_0 = arith.constant 0 : i32
    return %c0_i32, %arg0 : i32, i32
  }
}

</mosaic_0001>

<bundles_post_ra>
// kernel: transformer_network_forward.1
= control target key start
LH: loop header
LB: loop body
LE: loop exit
PB: predicated region body
PF: predicated region fallthrough
CT: control target
= control target key end

     0   :  { %v311_v0 = vmov 1   ;;  %v312_v1 = vmov 0   ;;  %vm73_vm0 = vcmask 97280   ;;  %v35_v9 = vlaneseq  ;;  %s389_s1 = inlined_call_operand.vmem [shape: f32[3,12,12], index: 1, kind: input, shape index: {}]   ;;  %s390_s2 = inlined_call_operand.vmem [shape: f32[2,12,1], index: 2, kind: input, shape index: {}]   ;;  %s391_s0 = inlined_call_operand.vmem [shape: f32[2,128], index: 0, kind: input, shape index: {}]   ;;  %s392_s3 = inlined_call_operand.vmem [shape: f32[10,128], index: 3, kind: output, shape index: {}]  }
   0x1   :  { %309 = vset.pattern.permute.xlu1 %v311_v0  ;;  %308 = vset.pattern.permute.xlu0 %v312_v1  ;;  %v15_v2 = vld [vmem:[%s389_s1] sm:$0xff]  ;;  %v16_v3 = vld [vmem:[%s389_s1 + $0x8] sm:$0xf]  ;;  %v23_v6 = vld [vmem:[%s390_s2 + $0x10] sm:$0xff]  ;;  %vm80_vm1 = vcmask 1043456   ;;  %vm313_vm4 = vmmov 1  }
   0x2   :  { %42 = vperm.xlu1 %309, %v15_v2   ;;  %27 = vperm.xlu0 %308, %v15_v2   ;;  %v21_v4 = vld [vmem:[%s390_s2] sm:$0xff]  ;;  %v22_v5 = vld [vmem:[%s390_s2 + $0x8] sm:$0xf]  ;;  %v24_v7 = vld [vmem:[%s390_s2 + $0x18] sm:$0xf]  ;;  %v36_v10 = vshrl.u32 %v35_v9, 7 }
   0x3   :  { %v17_v8 = vld [vmem:[%s389_s1 + $0x10] sm:$0xff]  ;;  %v14_v13 = vld [vmem:[%s391_s0] sm:$0x3]  ;;  %vm359_vm5 = vmpackc.low %vm80_vm1, %vm313_vm4 }
   0x4   :  { %283 = vmatprep.mubr.msk.f32.mxu0 %vm73_vm0, %v17_v8  ;;  %v51_v11 = vsub.s32 1, %v36_v10  ;;  %v37_v12 = vsub.s32 0, %v36_v10  ;;  %v18_v34 = vld [vmem:[%s389_s1 + $0x18] sm:$0xf]  ;;  %v19_v35 = vld [vmem:[%s389_s1 + $0x20] sm:$0xff] }
   0x5   :  { %290 = vmatprep.mubr.msk.f32.mxu1 %vm73_vm0, %v19_v35  ;;  %v20_v45 = vld [vmem:[%s389_s1 + $0x28] sm:$0xf] }
   0x6   :  { %46 = vperm.xlu1 %309, %v16_v3   ;;  %32 = vperm.xlu0 %308, %v16_v3   ;;  %v52_v14 = vrot.slane %v14_v13, %v51_v11  ;;  %v38_v15 = vrot.slane %v14_v13, %v37_v12 }
   0xa   :  { %310 = vset.pattern.permute.xlu1 %v312_v1  ;;  %61 = vperm.xlu0 %308, %v21_v4  }
   0xb   :  { %66 = vperm.xlu1 %310, %v22_v5  }
   0xe   :  { %163 = vperm.xlu0 %308, %v23_v6  }
   0xf   :  { %168 = vperm.xlu1 %310, %v24_v7  }
  0x81   :  { %v43_v16 = vpop.permute.xlu1 %42  ;;  %v28_v17 = vpop.permute.xlu0 %27 }
  0x82   :  { %v53_v18 = vmul.f32 %v52_v14, %v43_v16  ;;  %v39_v19 = vmul.f32 %v38_v15, %v28_v17 }
  0x84   :  { %v55_v24 = vadd.f32 %v53_v18, %v39_v19 }
  0x85   :  { %v47_v20 = vpop.permute.xlu1 %46  ;;  %v33_v21 = vpop.permute.xlu0 %32 }
  0x86   :  { %v54_v22 = vmul.f32 %v52_v14, %v47_v20  ;;  %v40_v23 = vmul.f32 %v38_v15, %v33_v21  ;;  %vm57_vm2 = vcmp.gt.f32.partialorder %v55_v24, 0.0 }
  0x88   :  { %v56_v25 = vadd.f32 %v54_v22, %v40_v23 }
  0x89   :  { %v62_v26 = vpop.permute.xlu0 %61 }
  0x8a   :  { %v69_v27 = vmul.f32 %v62_v26, %v55_v24  ;;  %v67_v28 = vpop.permute.xlu1 %66  ;;  %vm58_vm3 = vcmp.gt.f32.partialorder %v56_v25, 0.0 }
  0x8b   :  { %v70_v29 = vmul.f32 %v67_v28, %v56_v25 }
  0x8c   :  { %v71_v30 = vsel %vm57_vm2, %v55_v24, %v69_v27 }
  0x8d   :  { %v72_v31 = vsel %vm58_vm3, %v56_v25, %v70_v29  ;;  %v164_v38 = vpop.permute.xlu0 %163 }
  0x8e   :  { %v293_v33 = vpack.c.bf16 %v72_v31, %v71_v30  ;;  %v169_v36 = vpop.permute.xlu1 %168 }
  0x90   :  { %295 = vmatprep.subr.msk.bf16.mxu0 %vm359_vm5, %v293_v33 }
  0x91   :  { %298 = vmatpush3.bf16.msk.msra.mxu0 %vm359_vm5, %v293_v33 }
  0x94   :  { %284 = vmatmul.mubr.msk.f32.vlgmr.msra.gmra.mrb[0].mxu0 %vm73_vm0, %v18_v34 }
 0x167   :  { %v285_v37 = vpop.f32.mrb[0].mxu0 }
 0x168   :  { %vm160_vm6 = vcmp.gt.f32.partialorder %v285_v37, 0.0  ;;  %v172_v39 = vmul.f32 %v285_v37, %v169_v36  ;;  %v150_v40 = vpop.f32.mrb[1].mxu0 }
 0x169   :  { %vm159_vm7 = vcmp.gt.f32.partialorder %v150_v40, 0.0  ;;  %v171_v41 = vmul.f32 %v164_v38, %v150_v40 }
 0x16a   :  { %v174_v42 = vsel %vm160_vm6, %v285_v37, %v172_v39 }
 0x16b   :  { %v173_v43 = vsel %vm159_vm7, %v150_v40, %v171_v41 }
 0x16c   :  { %v299_v44 = vpack.c.bf16 %v174_v42, %v173_v43 }
 0x16e   :  { %301 = vmatprep.subr.msk.bf16.mxu1 %vm359_vm5, %v299_v44 }
 0x16f   :  { %304 = vmatpush3.bf16.msk.msra.mxu1 %vm359_vm5, %v299_v44 }
 0x172   :  { %291 = vmatmul.mubr.msk.f32.vlgmr.msra.gmra.mrb[0].mxu1 %vm73_vm0, %v20_v45 }
 0x245   :  { %v292_v46 = vpop.f32.mrb[0].mxu1 }
 0x246   :  { %260 = vst [vmem:[%s392_s3 + $0x8] sm:$0x3] %v292_v46  ;;  %v250_v47 = vpop.f32.mrb[1].mxu1 }
 0x247   :  { %259 = vst [vmem:[%s392_s3] sm:$0xff] %v250_v47 }

</bundles_post_ra>
